<compile_context>
chip_gen: v6e
topology: v6e:2x2x1
jax: 0.10.0
libtpu: 0.0.40
codegen_flags: <defaults>
</compile_context>

<pallas_src>
import functools

import jax
import jax.numpy as jnp
from jax.experimental import pallas as pl
from jax.experimental.pallas import tpu as pltpu


def _round_up(a, m):
    return ((a + m - 1) // m) * m


def _cdiv(a, b):
    return (a + b - 1) // b


def _physical_vmem_bytes():
    """Per-core VMEM capacity; conservative 64 MiB (v7x) fallback."""
    try:
        info = pltpu.get_tpu_info()
        v = getattr(info, "vmem_capacity_bytes", None)
        if v:
            return int(v)
    except Exception:
        pass
    return 64 * 1024 * 1024


# ----------------------------------------------------------------------------
# Kernel: full AE forward on one batch tile.
# ----------------------------------------------------------------------------
def ae_kernel(x_ref, w_ref, b_ref, out_ref, *, layers, sub_rows, n_sub):
    """Runs the fused layer chain over `n_sub` row sub-tiles of `sub_rows` rows.

    `layers` is a static tuple of (w_row, b_row, fan_in, fan_out, act); each
    layer is a static slice of the packed bf16 weight buffer (w_ref) and the
    packed f32 bias buffer (b_ref).  Matmuls use bf16 operands with f32
    accumulation; bias adds and activations stay in f32.
    """

    def body(s, carry):
        r0 = pl.multiple_of(s * sub_rows, sub_rows)
        h = x_ref[pl.ds(r0, sub_rows), :].astype(jnp.float32)
        for (w_row, b_row, fan_in, fan_out, act) in layers:
            w = w_ref[w_row:w_row + fan_in, :fan_out]      # bf16, static slice
            b = b_ref[b_row:b_row + 1, :fan_out]           # f32  (1, fan_out)
            h = jnp.dot(h.astype(jnp.bfloat16), w,
                        preferred_element_type=jnp.float32) + b
            if act == "relu":
                h = jnp.maximum(h, 0.0)
            elif act == "sigmoid":
                h = jax.nn.sigmoid(h)
        out_ref[pl.ds(r0, sub_rows), :] = h.astype(out_ref.dtype)
        return carry

    jax.lax.fori_loop(0, n_sub, body, 0)


# ----------------------------------------------------------------------------
# Parameter packing: one bf16 weight buffer + one f32 bias buffer.
# ----------------------------------------------------------------------------
def _pack_params(layer_params, lane_w):
    w_blocks, meta, r = [], [], 0
    n_layers = len(layer_params)
    b_buf = jnp.zeros((8 * n_layers, lane_w), jnp.float32)
    for i, (w, b, act) in enumerate(layer_params):
        fan_in, fan_out = int(w.shape[0]), int(w.shape[1])
        rows = _round_up(fan_in, 16)                       # bf16 sublane-pack aligned
        w_blocks.append(jnp.zeros((rows, lane_w), jnp.bfloat16)
                        .at[:fan_in, :fan_out].set(w.astype(jnp.bfloat16)))
        b_buf = b_buf.at[8 * i, :fan_out].set(b.astype(jnp.float32))
        meta.append((r, 8 * i, fan_in, fan_out, act))
        r += rows
    return jnp.concatenate(w_blocks, axis=0), b_buf, tuple(meta)


# ----------------------------------------------------------------------------
# Wrapper: fuse bottleneck, fold samples into lanes, pack params, tile batch.
# ----------------------------------------------------------------------------
def ae_forward(x, params, *, target_samples_per_step=8192):
    B, num_col = x.shape
    dtype = x.dtype
    itemsize = jnp.dtype(dtype).itemsize

    # ---- fuse the activation-free 16 -> 3 -> 16 bottleneck (exact: no
    # nonlinearity between encoder's last and decoder's first Linear) ---------
    (w1, b1), (w2, b2), (w3, b3), (w4, b4), \
        (w5, b5), (w6, b6), (w7, b7), (w8, b8) = params
    w45 = w4 @ w5                    # (16, 16)
    b45 = b4 @ w5 + b5               # (16,)
    layer_params = [
        (w1, b1, "relu"), (w2, b2, "relu"), (w3, b3, "relu"),
        (w45, b45, "relu"),          # fused 16->(3)->16, ReLU from decoder
        (w6, b6, "relu"), (w7, b7, "relu"), (w8, b8, "sigmoid"),
    ]

    # ---- lane-dense I/O: fold `fold` samples per 128-lane row via
    # block-diagonal weights (numerically identical per sample) ---------------
    fold = 1
    if num_col < 128 and 128 % num_col == 0:
        fold = 128 // num_col
        while fold > 1 and fold * max(64, num_col) > 512:  # keep folded W small
            fold //= 2
    if fold > 1:
        layer_params = [
            (jax.scipy.linalg.block_diag(*((w,) * fold)), jnp.tile(b, fold), act)
            for (w, b, act) in layer_params
        ]
    io_cols = num_col * fold                                # 128 when fully folded

    lane_w = _round_up(max(max(int(w.shape[1]) for (w, _, _) in layer_params),
                           io_cols, 128), 128)
    w_buf, b_buf, layer_meta = _pack_params(layer_params, lane_w)

    # ---- VMEM budget (128-lane padded, double-buffered) & batch tiling ------
    phys_vmem = _physical_vmem_bytes()
    cap = int(phys_vmem * 3 // 4)                # ~48 MiB v7x, ~96 MiB v5e/v6e
    io_cols_pad = _round_up(io_cols, 128)
    per_row = 2 * 2 * io_cols_pad * itemsize     # (in + out) x double-buffered
    fixed = 2 * (w_buf.size * 2 + b_buf.size * 4)          # resident params (x2 bufs)
    fixed += 8 * 1024 * 1024                                # intermediates / scratch slack

    Bf = _cdiv(B, fold)                                     # rows after folding
    needed = _round_up(Bf, 8)
    target_rows = _round_up(_cdiv(target_samples_per_step, fold), 8)
    max_rows = max(8, ((cap - fixed) // per_row) // 8 * 8)
    tile_rows = max(8, min(needed, target_rows, max_rows))
    n_steps = _cdiv(needed, tile_rows)

    # v7x only (2 TensorCores): split a single big tile in two so the
    # "parallel" grid axis can shard across cores; skip on small batches and
    # on single-core v5e/v6e (128 MiB VMEM => not v7x-like).
    looks_like_v7x = phys_vmem <= 80 * 1024 * 1024
    if (looks_like_v7x and n_steps == 1
            and B * num_col * 2 * itemsize > (1 << 20)):
        half = _round_up(_cdiv(tile_rows, 2), 8)
        if 8 <= half < tile_rows:
            tile_rows = half
            n_steps = _cdiv(needed, tile_rows)

    # Row sub-tile inside the kernel: keep the live activation <= ~32-64 vregs.
    sub_cap = 128 if lane_w > 128 else 256
    sub_rows = 8
    for cand in (256, 128, 64, 32, 16, 8):
        if cand <= sub_cap and tile_rows % cand == 0:
            sub_rows = cand
            break
    n_sub = tile_rows // sub_rows

    vmem_need = tile_rows * per_row + fixed
    vmem_limit = int(min(max(vmem_need, 32 * 1024 * 1024), cap))

    # ---- pad + fold the batch (free, contiguous reshape) --------------------
    Rp = n_steps * tile_rows
    Bp = Rp * fold
    if Bp != B:
        x = jnp.pad(x, ((0, Bp - B), (0, 0)))
    x = x.reshape(Rp, io_cols)

    x_spec = pl.BlockSpec((tile_rows, io_cols), lambda i: (i, 0))
    out_spec = pl.BlockSpec((tile_rows, io_cols), lambda i: (i, 0))
    # Constant index_map -> parameter buffers stay VMEM-resident across steps.
    w_spec = pl.BlockSpec(w_buf.shape, lambda i: (0, 0))
    b_spec = pl.BlockSpec(b_buf.shape, lambda i: (0, 0))

    out = pl.pallas_call(
        functools.partial(ae_kernel, layers=layer_meta,
                          sub_rows=sub_rows, n_sub=n_sub),
        out_shape=jax.ShapeDtypeStruct((Rp, io_cols), dtype),
        grid_spec=pltpu.PrefetchScalarGridSpec(
            num_scalar_prefetch=0,
            grid=(n_steps,),
            in_specs=[x_spec, w_spec, b_spec],
            out_specs=out_spec,
        ),
        compiler_params=pltpu.CompilerParams(
            dimension_semantics=("parallel",),
            vmem_limit_bytes=vmem_limit,
        ),
    )(x, w_buf, b_buf)

    out = out.reshape(Bp, num_col)
    return out[:B] if Bp != B else out


# ----------------------------------------------------------------------------
# Deterministic parameter init (PyTorch nn.Linear-like uniform init).
# Weights are stored (fan_in, fan_out), i.e. the transpose of torch Linear.weight.
# ----------------------------------------------------------------------------
def init_params(key, num_col):
    dims = [
        (num_col, 64), (64, 32), (32, 16), (16, 3),   # encoder
        (3, 16), (16, 32), (32, 64), (64, num_col),   # decoder
    ]
    params = []
    for (fan_in, fan_out) in dims:
        key, kw, kb = jax.random.split(key, 3)
        bound = 1.0 / jnp.sqrt(fan_in)
        w = jax.random.uniform(kw, (fan_in, fan_out), jnp.float32,
                               minval=-bound, maxval=bound)
        b = jax.random.uniform(kb, (fan_out,), jnp.float32,
                               minval=-bound, maxval=bound)
        params.append((w, b))
    return params


# Pure-JAX reference (original, unfused 8-layer f32 forward).
def ae_reference(x, params):
    h = x
    acts = ["relu", "relu", "relu", None, "relu", "relu", "relu", "sigmoid"]
    for (w, b), act in zip(params, acts):
        h = h @ w + b
        if act == "relu":
            h = jnp.maximum(h, 0.0)
        elif act == "sigmoid":
            h = jax.nn.sigmoid(h)
    return h


if __name__ == "__main__":
    num_col = 32
    B = 20   # not a multiple of the fold/tile: exercises padding + fold path

    key = jax.random.PRNGKey(0)
    key, kx = jax.random.split(key)
    x = jax.random.uniform(kx, (B, num_col), jnp.float32)
    params = init_params(key, num_col)

    out = jax.block_until_ready(ae_forward(x, params))
    ref = ae_reference(x, params)

    assert out.shape == (B, num_col)
    # bf16 matmul operands (f32 accumulation) -> relaxed tolerance vs f32 ref.
    assert jnp.allclose(out, ref, atol=5e-2, rtol=5e-2), "mismatch vs reference"

    print("KERNEL_OK")
</pallas_src>

<mosaic_0001>
module attributes {stable_mosaic.version = 11 : i64} {
  func.func @ae_kernel(%arg0: i32, %arg1: memref<8x128xf32, #tpu.memory_space<vmem>>, %arg2: memref<1024x256xbf16, #tpu.memory_space<vmem>>, %arg3: memref<56x256xf32, #tpu.memory_space<vmem>>, %arg4: memref<8x128xf32, #tpu.memory_space<vmem>>) attributes {dimension_semantics = [#tpu.dimension_semantics<parallel>], iteration_bounds = array<i64: 1>, scalar_prefetch = 0 : i64, scratch_operands = 0 : i64, tpu.core_type = #tpu.core_type<tc>, window_params = [{transform_indices = @transform_0, window_bounds = array<i64: 8, 128>}, {pipeline_mode = #tpu.pipeline_mode<synchronous>, transform_indices = @transform_1, window_bounds = array<i64: 1024, 256>}, {pipeline_mode = #tpu.pipeline_mode<synchronous>, transform_indices = @transform_2, window_bounds = array<i64: 56, 256>}, {transform_indices = @transform_3, window_bounds = array<i64: 8, 128>}]} {
    %c0_i32 = arith.constant 0 : i32
    %c8_i32 = arith.constant 8 : i32
    %0 = arith.muli %c0_i32, %c8_i32 : i32
    %1 = tpu.assume_multiple %0, 8 : i32
    %2 = arith.index_cast %1 : i32 to index
    %c0 = arith.constant 0 : index
    %3 = vector.load %arg1[%2, %c0] : memref<8x128xf32, #tpu.memory_space<vmem>>, vector<8x128xf32>
    %c0_0 = arith.constant 0 : index
    %c0_1 = arith.constant 0 : index
    %4 = vector.load %arg2[%c0_0, %c0_1] : memref<1024x256xbf16, #tpu.memory_space<vmem>>, vector<128x256xbf16>
    %c0_2 = arith.constant 0 : index
    %c0_3 = arith.constant 0 : index
    %5 = vector.load %arg3[%c0_2, %c0_3] : memref<56x256xf32, #tpu.memory_space<vmem>>, vector<1x256xf32>
    %6 = arith.truncf %3 : vector<8x128xf32> to vector<8x128xbf16>
    %cst = arith.constant dense<0.000000e+00> : vector<8x256xf32>
    %7 = tpu.matmul %6, %4, %cst {dimension_numbers = #tpu.dot_dimension_numbers<[1], [0], [0], [1], [0, 0, 1, 1], [], []>} : vector<8x128xbf16>, vector<128x256xbf16>, vector<8x256xf32> -> vector<8x256xf32>
    %8 = vector.broadcast %5 : vector<1x256xf32> to vector<8x256xf32>
    %9 = arith.addf %7, %8 : vector<8x256xf32>
    %cst_4 = arith.constant 0.000000e+00 : f32
    %10 = vector.broadcast %cst_4 : f32 to vector<8x256xf32>
    %11 = arith.maximumf %9, %10 : vector<8x256xf32>
    %c128 = arith.constant 128 : index
    %c0_5 = arith.constant 0 : index
    %12 = vector.load %arg2[%c128, %c0_5] : memref<1024x256xbf16, #tpu.memory_space<vmem>>, vector<256x128xbf16>
    %c8 = arith.constant 8 : index
    %c0_6 = arith.constant 0 : index
    %13 = vector.load %arg3[%c8, %c0_6] : memref<56x256xf32, #tpu.memory_space<vmem>>, vector<1x128xf32>
    %14 = arith.truncf %11 : vector<8x256xf32> to vector<8x256xbf16>
    %cst_7 = arith.constant dense<0.000000e+00> : vector<8x128xf32>
    %15 = tpu.matmul %14, %12, %cst_7 {dimension_numbers = #tpu.dot_dimension_numbers<[1], [0], [0], [1], [0, 0, 1, 1], [], []>} : vector<8x256xbf16>, vector<256x128xbf16>, vector<8x128xf32> -> vector<8x128xf32>
    %16 = vector.broadcast %13 : vector<1x128xf32> to vector<8x128xf32>
    %17 = arith.addf %15, %16 : vector<8x128xf32>
    %cst_8 = arith.constant 0.000000e+00 : f32
    %18 = vector.broadcast %cst_8 : f32 to vector<8x128xf32>
    %19 = arith.maximumf %17, %18 : vector<8x128xf32>
    %c384 = arith.constant 384 : index
    %c0_9 = arith.constant 0 : index
    %20 = vector.load %arg2[%c384, %c0_9] : memref<1024x256xbf16, #tpu.memory_space<vmem>>, vector<128x64xbf16>
    %c16 = arith.constant 16 : index
    %c0_10 = arith.constant 0 : index
    %21 = vector.load %arg3[%c16, %c0_10] : memref<56x256xf32, #tpu.memory_space<vmem>>, vector<1x64xf32>
    %22 = arith.truncf %19 : vector<8x128xf32> to vector<8x128xbf16>
    %cst_11 = arith.constant dense<0.000000e+00> : vector<8x64xf32>
    %23 = tpu.matmul %22, %20, %cst_11 {dimension_numbers = #tpu.dot_dimension_numbers<[1], [0], [0], [1], [0, 0, 1, 1], [], []>} : vector<8x128xbf16>, vector<128x64xbf16>, vector<8x64xf32> -> vector<8x64xf32>
    %24 = vector.broadcast %21 : vector<1x64xf32> to vector<8x64xf32>
    %25 = arith.addf %23, %24 : vector<8x64xf32>
    %cst_12 = arith.constant 0.000000e+00 : f32
    %26 = vector.broadcast %cst_12 : f32 to vector<8x64xf32>
    %27 = arith.maximumf %25, %26 : vector<8x64xf32>
    %c512 = arith.constant 512 : index
    %c0_13 = arith.constant 0 : index
    %28 = vector.load %arg2[%c512, %c0_13] : memref<1024x256xbf16, #tpu.memory_space<vmem>>, vector<64x64xbf16>
    %c24 = arith.constant 24 : index
    %c0_14 = arith.constant 0 : index
    %29 = vector.load %arg3[%c24, %c0_14] : memref<56x256xf32, #tpu.memory_space<vmem>>, vector<1x64xf32>
    %30 = arith.truncf %27 : vector<8x64xf32> to vector<8x64xbf16>
    %cst_15 = arith.constant dense<0.000000e+00> : vector<8x64xf32>
    %31 = tpu.matmul %30, %28, %cst_15 {dimension_numbers = #tpu.dot_dimension_numbers<[1], [0], [0], [1], [0, 0, 1, 1], [], []>} : vector<8x64xbf16>, vector<64x64xbf16>, vector<8x64xf32> -> vector<8x64xf32>
    %32 = vector.broadcast %29 : vector<1x64xf32> to vector<8x64xf32>
    %33 = arith.addf %31, %32 : vector<8x64xf32>
    %cst_16 = arith.constant 0.000000e+00 : f32
    %34 = vector.broadcast %cst_16 : f32 to vector<8x64xf32>
    %35 = arith.maximumf %33, %34 : vector<8x64xf32>
    %c576 = arith.constant 576 : index
    %c0_17 = arith.constant 0 : index
    %36 = vector.load %arg2[%c576, %c0_17] : memref<1024x256xbf16, #tpu.memory_space<vmem>>, vector<64x128xbf16>
    %c32 = arith.constant 32 : index
    %c0_18 = arith.constant 0 : index
    %37 = vector.load %arg3[%c32, %c0_18] : memref<56x256xf32, #tpu.memory_space<vmem>>, vector<1x128xf32>
    %38 = arith.truncf %35 : vector<8x64xf32> to vector<8x64xbf16>
    %cst_19 = arith.constant dense<0.000000e+00> : vector<8x128xf32>
    %39 = tpu.matmul %38, %36, %cst_19 {dimension_numbers = #tpu.dot_dimension_numbers<[1], [0], [0], [1], [0, 0, 1, 1], [], []>} : vector<8x64xbf16>, vector<64x128xbf16>, vector<8x128xf32> -> vector<8x128xf32>
    %40 = vector.broadcast %37 : vector<1x128xf32> to vector<8x128xf32>
    %41 = arith.addf %39, %40 : vector<8x128xf32>
    %cst_20 = arith.constant 0.000000e+00 : f32
    %42 = vector.broadcast %cst_20 : f32 to vector<8x128xf32>
    %43 = arith.maximumf %41, %42 : vector<8x128xf32>
    %c640 = arith.constant 640 : index
    %c0_21 = arith.constant 0 : index
    %44 = vector.load %arg2[%c640, %c0_21] : memref<1024x256xbf16, #tpu.memory_space<vmem>>, vector<128x256xbf16>
    %c40 = arith.constant 40 : index
    %c0_22 = arith.constant 0 : index
    %45 = vector.load %arg3[%c40, %c0_22] : memref<56x256xf32, #tpu.memory_space<vmem>>, vector<1x256xf32>
    %46 = arith.truncf %43 : vector<8x128xf32> to vector<8x128xbf16>
    %cst_23 = arith.constant dense<0.000000e+00> : vector<8x256xf32>
    %47 = tpu.matmul %46, %44, %cst_23 {dimension_numbers = #tpu.dot_dimension_numbers<[1], [0], [0], [1], [0, 0, 1, 1], [], []>} : vector<8x128xbf16>, vector<128x256xbf16>, vector<8x256xf32> -> vector<8x256xf32>
    %48 = vector.broadcast %45 : vector<1x256xf32> to vector<8x256xf32>
    %49 = arith.addf %47, %48 : vector<8x256xf32>
    %cst_24 = arith.constant 0.000000e+00 : f32
    %50 = vector.broadcast %cst_24 : f32 to vector<8x256xf32>
    %51 = arith.maximumf %49, %50 : vector<8x256xf32>
    %c768 = arith.constant 768 : index
    %c0_25 = arith.constant 0 : index
    %52 = vector.load %arg2[%c768, %c0_25] : memref<1024x256xbf16, #tpu.memory_space<vmem>>, vector<256x128xbf16>
    %c48 = arith.constant 48 : index
    %c0_26 = arith.constant 0 : index
    %53 = vector.load %arg3[%c48, %c0_26] : memref<56x256xf32, #tpu.memory_space<vmem>>, vector<1x128xf32>
    %54 = arith.truncf %51 : vector<8x256xf32> to vector<8x256xbf16>
    %cst_27 = arith.constant dense<0.000000e+00> : vector<8x128xf32>
    %55 = tpu.matmul %54, %52, %cst_27 {dimension_numbers = #tpu.dot_dimension_numbers<[1], [0], [0], [1], [0, 0, 1, 1], [], []>} : vector<8x256xbf16>, vector<256x128xbf16>, vector<8x128xf32> -> vector<8x128xf32>
    %56 = vector.broadcast %53 : vector<1x128xf32> to vector<8x128xf32>
    %57 = arith.addf %55, %56 : vector<8x128xf32>
    %58 = arith.negf %57 : vector<8x128xf32>
    %59 = math.exp %58 : vector<8x128xf32>
    %cst_28 = arith.constant 1.000000e+00 : f32
    %60 = vector.broadcast %cst_28 : f32 to vector<8x128xf32>
    %61 = arith.addf %60, %59 : vector<8x128xf32>
    %62 = arith.divf %60, %61 : vector<8x128xf32>
    %63 = arith.index_cast %1 : i32 to index
    %c0_29 = arith.constant 0 : index
    %64 = vector.load %arg4[%63, %c0_29] : memref<8x128xf32, #tpu.memory_space<vmem>>, vector<8x128xf32>
    tpu.vector_store %arg4[%63, %c0_29], %62 {strides = array<i32>} : memref<8x128xf32, #tpu.memory_space<vmem>>, vector<8x128xf32>,
    %c1_i32 = arith.constant 1 : i32
    return
  }
  func.func @transform_0(%arg0: i32) -> (i32, i32) {
    %c0_i32 = arith.constant 0 : i32
    %c0_i32_0 = arith.constant 0 : i32
    return %arg0, %c0_i32 : i32, i32
  }
  func.func @transform_1(%arg0: i32) -> (i32, i32) {
    %c0_i32 = arith.constant 0 : i32
    %c0_i32_0 = arith.constant 0 : i32
    %c0_i32_1 = arith.constant 0 : i32
    return %c0_i32, %c0_i32_0 : i32, i32
  }
  func.func @transform_2(%arg0: i32) -> (i32, i32) {
    %c0_i32 = arith.constant 0 : i32
    %c0_i32_0 = arith.constant 0 : i32
    %c0_i32_1 = arith.constant 0 : i32
    return %c0_i32, %c0_i32_0 : i32, i32
  }
  func.func @transform_3(%arg0: i32) -> (i32, i32) {
    %c0_i32 = arith.constant 0 : i32
    %c0_i32_0 = arith.constant 0 : i32
    return %arg0, %c0_i32 : i32, i32
  }
}

</mosaic_0001>

<bundles_post_ra>
// kernel: tpu_custom_call.1
= control target key start
LH: loop header
LB: loop body
LE: loop exit
PB: predicated region body
PF: predicated region fallthrough
CT: control target
= control target key end

     0   :  { %8 = vsyncpa [#allocation3], 0  ;;  %s1459_s0 = inlined_call_operand.hbm [shape: f32[8,128], index: 0, kind: input, shape index: {}]   ;;  %s1460_s1 = inlined_call_operand.hbm [shape: bf16[1024,256], index: 1, kind: input, shape index: {}]   ;;  %s1461_s2 = inlined_call_operand.hbm [shape: f32[56,256], index: 2, kind: input, shape index: {}]   ;;  %s1462_s3 = inlined_call_operand.hbm [shape: f32[8,128], index: 3, kind: output, shape index: {}]  }
   0x1   :  { %9 = vsyncpa [#allocation6], 0 }
   0x2   :  { %10 = vsyncpa [#allocation4], 0  ;;  %s1378_s12 = smov [#allocation5]  }
   0x3   :  { %s26_s13 = sshll.u32 %s1378_s12, 4  ;;  %s27_s13 = int_to_ptr.vmem [resolvable:$true] %s26_s13 }
   0x4   :  { %s1300_s14 = scalar_lea.vmem %s27_s13, 16384  ;;  %p1305_p1 = scmp.lt.s32.totalorder %s27_s13, %s27_s13 }
   0x5   :  { %p1301_p0 = scmp.ne.s32.totalorder %s27_s13, %s1300_s14  ;;  %p1306_p2 = scmp.lt.s32.totalorder %s1300_s14, %s1300_s14 }
   0x7   :  { %p1307_p3 = por %p1306_p2, %p1305_p1 }
   0x9   :  { %p1308_p4 = pnand %p1307_p3, %p1301_p0 }
   0xb   :  { %1311 = shalt.err (!%p1308_p4)
}
   0xc   :  { %s1379_s15 = smov 128   ;;  %s1380_s16 = smov 8  }
   0xd   :  { %32 = dma.hbm_to_vmem [thread:$0]  %s1460_s1, 16384, %s27_s13, [#allocation6], %s1379_s15, %s1379_s15, %s1380_s16  }
   0xe   :  { %s1381_s19 = smov [#allocation2]   ;;  %s1382_s21 = smov [#allocation7]  }
   0xf   :  { %s17_s20 = sshll.u32 %s1381_s19, 4  ;;  %s38_s22 = sshll.u32 %s1382_s21, 4  ;;  %s18_s20 = int_to_ptr.vmem [resolvable:$true] %s17_s20  ;;  %s39_s22 = int_to_ptr.vmem [resolvable:$true] %s38_s22 }
  0x10   :  { %s1320_s23 = scalar_lea.vmem %s18_s20, 128  ;;  %p1325_p6 = scmp.lt.s32.totalorder %s18_s20, %s18_s20 }
  0x11   :  { %p1321_p5 = scmp.ne.s32.totalorder %s18_s20, %s1320_s23  ;;  %p1326_p7 = scmp.lt.s32.totalorder %s1320_s23, %s1320_s23 }
  0x13   :  { %p1327_p8 = por %p1326_p7, %p1325_p6 }
  0x15   :  { %p1328_p9 = pnand %p1327_p8, %p1321_p5 }
  0x17   :  { %1331 = shalt.err (!%p1328_p9)
}
  0x18   :  { %20 = dma.hbm_to_vmem [thread:$0]  %s1459_s0, 128, %s18_s20, [#allocation3]  }
  0x19   :  { %s1340_s26 = scalar_lea.vmem %s39_s22, 1792  ;;  %p1345_p11 = scmp.lt.s32.totalorder %s39_s22, %s39_s22 }
  0x1a   :  { %p1341_p10 = scmp.ne.s32.totalorder %s39_s22, %s1340_s26  ;;  %p1346_p12 = scmp.lt.s32.totalorder %s1340_s26, %s1340_s26 }
  0x1c   :  { %p1347_p13 = por %p1346_p12, %p1345_p11 }
  0x1e   :  { %p1348_p0 = pnand %p1347_p13, %p1341_p10 }
  0x20   :  { %1351 = shalt.err (!%p1348_p0)
}
  0x21   :  { %s1383_s1 = smov 256   ;;  %s1384_s27 = smov 16  }
  0x22   :  { %44 = dma.hbm_to_vmem [thread:$0]  %s1461_s2, 1792, %s39_s22, [#allocation6], %s1383_s1, %s1383_s1, %s1384_s27  }
  0x23   :  { %1372 = dma.done.wait [#allocation3], 128  }
  0x24   :  { %1373 = vsyncadd [#allocation3], 4294967168 }
  0x25   :  { %1374 = dma.done.wait [#allocation6], 18176  }
  0x26   :  { %1375 = vsyncadd [#allocation6], 4294949120  ;;  %v1385_v0 = vmov 0   ;;  %v1192_v1 = vld [vmem:[#allocation5 + $0x74] ss:$8 sps:$4 sm:$0xff]   ;;  %v1386_v36 = vmov 0.0   ;;  %v75_v41 = vlaneseq }
  0x27   :  { %197 = vmatprep.mubr.bf16.mxu0 %v1385_v0  ;;  %v1194_v2 = vld [vmem:[#allocation5 + $0x70] ss:$8 sps:$4 sm:$0xff]   ;;  %165 = vmatprep.subr.bf16.mxu0 %v1192_v1  ;;  %v1195_v3 = vld [vmem:[#allocation5 + $0x64] ss:$8 sps:$4 sm:$0xff]   ;;  %v1197_v4 = vld [vmem:[#allocation5 + $0x60] ss:$8 sps:$4 sm:$0xff]  }
  0x28   :  { %166 = vmatpush1.bf16.msra.mxu0 %v1194_v2  ;;  %v1198_v5 = vld [vmem:[#allocation5 + $0x54] ss:$8 sps:$4 sm:$0xff]   ;;  %v1200_v6 = vld [vmem:[#allocation5 + $0x50] ss:$8 sps:$4 sm:$0xff]   ;;  %v1201_v7 = vld [vmem:[#allocation5 + $0x44] ss:$8 sps:$4 sm:$0xff]  }
  0x29   :  { %167 = vmatprep.subr.bf16.mxu0 %v1195_v3  ;;  %v1203_v8 = vld [vmem:[#allocation5 + $0x40] ss:$8 sps:$4 sm:$0xff]   ;;  %v1204_v9 = vld [vmem:[#allocation5 + $0x34] ss:$8 sps:$4 sm:$0xff]   ;;  %v1216_v10 = vld [vmem:[#allocation5 + $0x170] ss:$8 sps:$4 sm:$0xff]  }
  0x2a   :  { %v1217_v11 = vld [vmem:[#allocation5 + $0xf0] ss:$8 sps:$4 sm:$0xff]   ;;  %1074 = vmatprep.subr.bf16.mxu1 %v1216_v10  ;;  %v1218_v13 = vld [vmem:[#allocation5 + $0x160] ss:$8 sps:$4 sm:$0xff]   ;;  %v1207_v16 = vld [vmem:[#allocation5 + $0x24] ss:$8 sps:$4 sm:$0xff]  }
  0x2b   :  { %v1206_v12 = vld [vmem:[#allocation5 + $0x30] ss:$8 sps:$4 sm:$0xff]   ;;  %1075 = vmatpush3.bf16.msra.mxu1 %v1217_v11  ;;  %v1219_v14 = vld [vmem:[#allocation5 + $0xe0] ss:$8 sps:$4 sm:$0xff]   ;;  %v1210_v20 = vld [vmem:[#allocation5 + $0x14] ss:$8 sps:$4 sm:$0xff]  }
  0x2c   :  { %168 = vmatpush1.bf16.msra.mxu0 %v1197_v4  ;;  %1076 = vmatprep.subr.bf16.mxu1 %v1218_v13  ;;  %v1220_v15 = vld [vmem:[#allocation5 + $0x150] ss:$8 sps:$4 sm:$0xff]   ;;  %v1209_v17 = vld [vmem:[#allocation5 + $0x20] ss:$8 sps:$4 sm:$0xff]   ;;  %v1213_v22 = vld [vmem:[#allocation5 + $0x4] ss:$8 sps:$4 sm:$0xff]  }
  0x2d   :  { %169 = vmatprep.subr.bf16.mxu0 %v1198_v5  ;;  %v1221_v18 = vld [vmem:[#allocation5 + $0xd0] ss:$8 sps:$4 sm:$0xff]   ;;  %v1222_v19 = vld [vmem:[#allocation5 + $0x140] ss:$8 sps:$4 sm:$0xff]   ;;  %v1426_v42 = vshrl.u32 %v75_v41, 7  ;;  %vm1387_vm0 = vmmov 0  }
  0x2e   :  { %v1212_v21 = vld [vmem:[#allocation5 + $0x10] ss:$8 sps:$4 sm:$0xff]   ;;  %v1223_v23 = vld [vmem:[#allocation5 + $0xc0] ss:$8 sps:$4 sm:$0xff]   ;;  %vm521_vm1 = vcmask 523264   ;;  %s1388_s0 = smov [#allocation8]  }
  0x2f   :  { %1077 = vmatpush3.bf16.msra.mxu1 %v1219_v14  ;;  %v1224_v24 = vld [vmem:[#allocation5 + $0x130] ss:$8 sps:$4 sm:$0xff]   ;;  %v1215_v26 = vld [vmem:[#allocation5] ss:$8 sps:$4 sm:$0xff]   ;;  %v77_v43 = vsub.s32 0, %v1426_v42  ;;  %v81_v45 = vsub.s32 1, %v1426_v42 }
  0x30   :  { %170 = vmatpush1.bf16.msra.mxu0 %v1200_v6  ;;  %1078 = vmatprep.subr.bf16.mxu1 %v1220_v15  ;;  %v1225_v25 = vld [vmem:[#allocation5 + $0xb0] ss:$8 sps:$4 sm:$0xff]   ;;  %v1226_v28 = vld [vmem:[#allocation5 + $0x120] ss:$8 sps:$4 sm:$0xff]   ;;  %s981_s2 = sshll.u32 %s1388_s0, 4  ;;  %s982_s2 = int_to_ptr.vmem [resolvable:$true] %s981_s2 }
  0x31   :  { %171 = vmatprep.subr.bf16.mxu0 %v1201_v7  ;;  %v55_v27 = vld [vmem:[#allocation2] sm:$0xff]  ;;  %v1227_v29 = vld [vmem:[#allocation5 + $0xa0] ss:$8 sps:$4 sm:$0xff]   ;;  %v240_v1 = vld [vmem:[#allocation7 + $0x10] ss:$0 sm:$0xff]  ;;  %s1352_s30 = scalar_lea.vmem %s982_s2, 128  ;;  %p1357_p2 = scmp.lt.s32.totalorder %s982_s2, %s982_s2 }
  0x32   :  { %v73_v30 = vpack.c.bf16 %v55_v27, %v55_v27  ;;  %v1228_v31 = vld [vmem:[#allocation5 + $0x110] ss:$8 sps:$4 sm:$0xff]   ;;  %v1230_v33 = vld [vmem:[#allocation5 + $0x100] ss:$8 sps:$4 sm:$0xff]   ;;  %p1353_p1 = scmp.ne.s32.totalorder %s982_s2, %s1352_s30  ;;  %p1358_p3 = scmp.lt.s32.totalorder %s1352_s30, %s1352_s30 }
  0x33   :  { %1079 = vmatpush3.bf16.msra.mxu1 %v1221_v18  ;;  %v1229_v32 = vld [vmem:[#allocation5 + $0x90] ss:$8 sps:$4 sm:$0xff]   ;;  %v1231_v34 = vld [vmem:[#allocation5 + $0x80] ss:$8 sps:$4 sm:$0xff]  }
  0x34   :  { %172 = vmatpush1.bf16.msra.mxu0 %v1203_v8  ;;  %1080 = vmatprep.subr.bf16.mxu1 %v1222_v19  ;;  %v1232_v35 = vld [vmem:[#allocation5 + $0x1f0] ss:$8 sps:$4 sm:$0xff]   ;;  %v1233_v37 = vld [vmem:[#allocation5 + $0x1e0] ss:$8 sps:$4 sm:$0xff]   ;;  %p1359_p4 = por %p1358_p3, %p1357_p2 }
  0x35   :  { %173 = vmatprep.subr.bf16.mxu0 %v1204_v9  ;;  %v1234_v38 = vld [vmem:[#allocation5 + $0x1d0] ss:$8 sps:$4 sm:$0xff]   ;;  %v1235_v39 = vld [vmem:[#allocation5 + $0x1c0] ss:$8 sps:$4 sm:$0xff]  }
  0x36   :  { %v1236_v40 = vld [vmem:[#allocation5 + $0x1b0] ss:$8 sps:$4 sm:$0xff]   ;;  %v72_v44 = vld [vmem:[#allocation7] ss:$8 sm:$0x3]  ;;  %p1360_p5 = pnand %p1359_p4, %p1353_p1 }
  0x37   :  { %1081 = vmatpush3.bf16.msra.mxu1 %v1223_v23  ;;  %v78_v46 = vrot.slane %v72_v44, %v77_v43  ;;  %v82_v47 = vrot.slane %v72_v44, %v81_v45  ;;  %v1237_v58 = vld [vmem:[#allocation5 + $0x1a0] ss:$8 sps:$4 sm:$0xff]   ;;  %v1238_v59 = vld [vmem:[#allocation5 + $0x190] ss:$8 sps:$4 sm:$0xff]   ;;  %v1250_v23 = vld [vmem:[#allocation5 + $0x2f4] ss:$8 sps:$4 sm:$0xff]  }
  0x38   :  { %174 = vmatpush1.bf16.msra.mxu0 %v1206_v12  ;;  %1082 = vmatprep.subr.bf16.mxu1 %v1224_v24  ;;  %v1239_v60 = vld [vmem:[#allocation5 + $0x180] ss:$8 sps:$4 sm:$0xff]   ;;  %v1240_v61 = vld [vmem:[#allocation5 + $0x230] ss:$8 sps:$4 sm:$0xff]   ;;  %v1253_v24 = vld [vmem:[#allocation5 + $0x2e4] ss:$8 sps:$4 sm:$0xff]  }
  0x39   :  { %175 = vmatprep.subr.bf16.mxu0 %v1207_v16  ;;  %v1241_v62 = vld [vmem:[#allocation5 + $0x220] ss:$8 sps:$4 sm:$0xff]   ;;  %v1242_v9 = vld [vmem:[#allocation5 + $0x210] ss:$8 sps:$4 sm:$0xff]  }
  0x3a   :  { %v1243_v10 = vld [vmem:[#allocation5 + $0x200] ss:$8 sps:$4 sm:$0xff]   ;;  %v1254_v27 = vld [vmem:[#allocation5 + $0x2d0] ss:$8 sps:$4 sm:$0xff]  }
  0x3b   :  { %1083 = vmatpush3.bf16.msra.mxu1 %v1225_v25  ;;  %v396_v11 = vld [vmem:[#allocation7 + $0x20] ss:$0 sm:$0xff] }
  0x3c   :  { %176 = vmatpush1.bf16.msra.mxu0 %v1209_v17  ;;  %1084 = vmatprep.subr.bf16.mxu1 %v1226_v28  ;;  %v1244_v17 = vld [vmem:[#allocation5 + $0x270] ss:$8 sps:$4 sm:$0xff]   ;;  %v1251_v25 = vld [vmem:[#allocation5 + $0x2e0] ss:$8 sps:$4 sm:$0xff]   ;;  %v1259_v28 = vld [vmem:[#allocation5 + $0x2c4] ss:$8 sps:$4 sm:$0xff]  }
  0x3d   :  { %177 = vmatprep.subr.bf16.mxu0 %v1210_v20  ;;  %v1246_v20 = vld [vmem:[#allocation5 + $0x250] ss:$8 sps:$4 sm:$0xff]  }
  0x3f   :  { %1085 = vmatpush3.bf16.msra.mxu1 %v1227_v29  ;;  %v1257_v29 = vld [vmem:[#allocation5 + $0x2c0] ss:$8 sps:$4 sm:$0xff]  }
  0x40   :  { %178 = vmatpush1.bf16.msra.mxu0 %v1212_v21  ;;  %1086 = vmatprep.subr.bf16.mxu1 %v1228_v31  ;;  %v1247_v21 = vld [vmem:[#allocation5 + $0x240] ss:$8 sps:$4 sm:$0xff]   ;;  %v1260_v31 = vld [vmem:[#allocation5 + $0x2b0] ss:$8 sps:$4 sm:$0xff]  }
  0x41   :  { %179 = vmatprep.subr.bf16.mxu0 %v1213_v22  ;;  %v1248_v22 = vld [vmem:[#allocation5 + $0x2f0] ss:$8 sps:$4 sm:$0xff]  }
  0x43   :  { %1087 = vmatpush3.bf16.msra.mxu1 %v1229_v32  ;;  %v1265_v32 = vld [vmem:[#allocation5 + $0x2a4] ss:$8 sps:$4 sm:$0xff]  }
  0x44   :  { %180 = vmatpush1.bf16.msra.mxu0 %v1215_v26  ;;  %1088 = vmatprep.subr.bf16.mxu1 %v1230_v33  ;;  %v1256_v26 = vld [vmem:[#allocation5 + $0x2d4] ss:$8 sps:$4 sm:$0xff]   ;;  %v1263_v33 = vld [vmem:[#allocation5 + $0x2a0] ss:$8 sps:$4 sm:$0xff]  }
  0x45   :  { %1137 = vmatprep.subr.bf16.mxu0 %v1386_v36 }
  0x47   :  { %198 = vmatmul.mubr.bf16.vlgmr.msra.gmra.mxu0 %v73_v30  ;;  %1089 = vmatpush3.bf16.msra.mxu1 %v1231_v34  ;;  %v1262_v30 = vld [vmem:[#allocation5 + $0x2b4] ss:$8 sps:$4 sm:$0xff]  }
  0x48   :  { %1157 = vmatprep.subr.bf16.mxu1 %v1386_v36  ;;  %1138 = vmatpush3.bf16.msra.mxu0 %v1232_v35  ;;  %v1268_v34 = vld [vmem:[#allocation5 + $0x294] ss:$8 sps:$4 sm:$0xff]   ;;  %v1266_v35 = vld [vmem:[#allocation5 + $0x290] ss:$8 sps:$4 sm:$0xff]  }
  0x49   :  { %1139 = vmatprep.subr.bf16.mxu0 %v1386_v36  ;;  %1153 = vmatprep.mubr.msk.bf16.mxu0 %vm1387_vm0, %v1386_v36 }
  0x4c   :  { %1140 = vmatpush3.bf16.msra.mxu0 %v1233_v37 }
  0x4d   :  { %1141 = vmatprep.subr.bf16.mxu0 %v1386_v36 }
  0x50   :  { %1142 = vmatpush3.bf16.msra.mxu0 %v1234_v38 }
  0x51   :  { %1143 = vmatprep.subr.bf16.mxu0 %v1386_v36 }
  0x54   :  { %1144 = vmatpush3.bf16.msra.mxu0 %v1235_v39 }
  0x55   :  { %1145 = vmatprep.subr.bf16.mxu0 %v1386_v36 }
  0x58   :  { %1146 = vmatpush3.bf16.msra.mxu0 %v1236_v40 }
  0x59   :  { %1147 = vmatprep.subr.bf16.mxu0 %v1386_v36 }
  0x5c   :  { %1148 = vmatpush3.bf16.msra.mxu0 %v1237_v58  ;;  %v1281_v58 = vld [vmem:[#allocation5 + $0x330] ss:$8 sps:$4 sm:$0xff]  }
  0x5d   :  { %1149 = vmatprep.subr.bf16.mxu0 %v1386_v36 }
  0x60   :  { %1150 = vmatpush3.bf16.msra.mxu0 %v1238_v59  ;;  %v1282_v59 = vld [vmem:[#allocation5 + $0x3a0] ss:$8 sps:$4 sm:$0xff]  }
  0x61   :  { %1151 = vmatprep.subr.bf16.mxu0 %v1386_v36 }
  0x64   :  { %1152 = vmatpush3.bf16.msra.mxu0 %v1239_v60  ;;  %v1283_v60 = vld [vmem:[#allocation5 + $0x320] ss:$8 sps:$4 sm:$0xff]  }
  0x65   :  { %754 = vmatprep.subr.bf16.mxu0 %v1250_v23  ;;  %v829_v23 = vld [vmem:[#allocation7 + $0x60] ss:$0 sm:$0xff] }
 0x107   :  { %v199_v48 = vpop.f32.mrf.mxu0 }
 0x108   :  { %v200_v49 = vadd.f32 %v199_v48, %v78_v46  ;;  %v1269_v48 = vld [vmem:[#allocation5 + $0x280] ss:$8 sps:$4 sm:$0xff]  }
 0x109   :  { %v201_v50 = vpop.f32.mrf.mxu0 }
 0x10a   :  { %v202_v51 = vadd.f32 %v201_v50, %v82_v47  ;;  %v206_v52 = vmax.f32 %v200_v49, 0.0  ;;  %v1271_v47 = vld [vmem:[#allocation5 + $0x284] ss:$8 sps:$4 sm:$0xff]   ;;  %v1272_v49 = vld [vmem:[#allocation5 + $0x3f0] ss:$8 sps:$4 sm:$0xff]  }
 0x10b   :  { %v203_v53 = vpop.f32.mrf.mxu0  ;;  %v1273_v50 = vld [vmem:[#allocation5 + $0x370] ss:$8 sps:$4 sm:$0xff]  }
 0x10c   :  { %v207_v54 = vmax.f32 %v202_v51, 0.0  ;;  %v241_v57 = vpack.c.bf16 %v206_v52, %v206_v52  ;;  %v1274_v51 = vld [vmem:[#allocation5 + $0x3e0] ss:$8 sps:$4 sm:$0xff]   ;;  %v1276_v53 = vld [vmem:[#allocation5 + $0x3d0] ss:$8 sps:$4 sm:$0xff]  }
 0x10d   :  { %v204_v55 = vpop.f32.mrf.mxu0  ;;  %v1275_v52 = vld [vmem:[#allocation5 + $0x360] ss:$8 sps:$4 sm:$0xff]  }
 0x10e   :  { %v242_v56 = vpack.c.bf16 %v207_v54, %v207_v54  ;;  %v1277_v54 = vld [vmem:[#allocation5 + $0x350] ss:$8 sps:$4 sm:$0xff]   ;;  %v1278_v55 = vld [vmem:[#allocation5 + $0x3c0] ss:$8 sps:$4 sm:$0xff]  }
 0x110   :  { %371 = vmatprep.mubr.bf16.mxu1 %v242_v56  ;;  %v1279_v56 = vld [vmem:[#allocation5 + $0x340] ss:$8 sps:$4 sm:$0xff]  }
 0x111   :  { %372 = vmatmul.mubr.bf16.vlgmr.msra.gmra.mxu1 %v241_v57  ;;  %v1280_v57 = vld [vmem:[#allocation5 + $0x3b0] ss:$8 sps:$4 sm:$0xff]  }
 0x112   :  { %1165 = vmatprep.mubr.msk.bf16.mxu1 %vm1387_vm0, %v1386_v36  ;;  %1158 = vmatpush3.bf16.msra.mxu1 %v1240_v61  ;;  %v574_v61 = vld [vmem:[#allocation7 + $0x40] ss:$0 sm:$0xff] }
 0x113   :  { %1159 = vmatprep.subr.bf16.mxu1 %v1386_v36 }
 0x116   :  { %1160 = vmatpush3.bf16.msra.mxu1 %v1241_v62 }
 0x117   :  { %1161 = vmatprep.subr.bf16.mxu1 %v1386_v36 }
 0x11a   :  { %1162 = vmatpush3.bf16.msra.mxu1 %v1242_v9  ;;  %v1287_v9 = vld [vmem:[#allocation5 + $0x300] ss:$8 sps:$4 sm:$0xff]  }
 0x11b   :  { %1163 = vmatprep.subr.bf16.mxu1 %v1386_v36 }
 0x11e   :  { %1164 = vmatpush3.bf16.msra.mxu1 %v1243_v10  ;;  %v661_v10 = vld [vmem:[#allocation7 + $0x50] ss:$8 sm:$0x3] }
 0x11f   :  { %1169 = vmatprep.subr.bf16.mxu1 %v1386_v36 }
 0x1d1   :  { %v1090_v63 = vpop.f32.mrf.mxu1 }
 0x1d3   :  { %v1091_v2 = vpop.f32.mrf.mxu1 }
 0x1d4   :  { %v1092_v3 = vadd.f32 %v1091_v2, %v1090_v63 }
 0x1d5   :  { %v1093_v4 = vpop.f32.mrf.mxu1 }
 0x1d6   :  { %v374_v5 = vadd.f32 %v1092_v3, %v240_v1 }
 0x1d7   :  { %v1094_v6 = vpop.f32.mrf.mxu1 }
 0x1d8   :  { %v379_v7 = vmax.f32 %v374_v5, 0.0  ;;  %v1284_v6 = vld [vmem:[#allocation5 + $0x390] ss:$8 sps:$4 sm:$0xff]  }
 0x1da   :  { %v397_v8 = vpack.c.bf16 %v379_v7, %v379_v7  ;;  %v1285_v7 = vld [vmem:[#allocation5 + $0x310] ss:$8 sps:$4 sm:$0xff]  }
 0x1dc   :  { %1154 = vmatmul.mubr.bf16.vlgmr.msra.gmra.mxu0 %v397_v8  ;;  %v1286_v8 = vld [vmem:[#allocation5 + $0x380] ss:$8 sps:$4 sm:$0xff]  }
 0x1dd   :  { %786 = vmatprep.mubr.bf16.mxu0 %v1385_v0  ;;  %v1245_v0 = vld [vmem:[#allocation5 + $0x260] ss:$8 sps:$4 sm:$0xff]   ;;  %755 = vmatpush1.bf16.msra.mxu0 %v1248_v22 }
 0x1de   :  { %756 = vmatprep.subr.bf16.mxu0 %v1253_v24 }
 0x1e1   :  { %757 = vmatpush1.bf16.msra.mxu0 %v1251_v25 }
 0x1e2   :  { %758 = vmatprep.subr.bf16.mxu0 %v1256_v26 }
 0x1e5   :  { %759 = vmatpush1.bf16.msra.mxu0 %v1254_v27 }
 0x1e6   :  { %760 = vmatprep.subr.bf16.mxu0 %v1259_v28 }
 0x1e9   :  { %761 = vmatpush1.bf16.msra.mxu0 %v1257_v29 }
 0x1ea   :  { %762 = vmatprep.subr.bf16.mxu0 %v1262_v30 }
 0x1ed   :  { %763 = vmatpush1.bf16.msra.mxu0 %v1260_v31 }
 0x1ee   :  { %764 = vmatprep.subr.bf16.mxu0 %v1265_v32 }
 0x1f1   :  { %765 = vmatpush1.bf16.msra.mxu0 %v1263_v33 }
 0x1f2   :  { %766 = vmatprep.subr.bf16.mxu0 %v1268_v34 }
 0x1f5   :  { %767 = vmatpush1.bf16.msra.mxu0 %v1266_v35 }
 0x1f6   :  { %768 = vmatprep.subr.bf16.mxu0 %v1271_v47 }
 0x1f9   :  { %769 = vmatpush1.bf16.msra.mxu0 %v1269_v48 }
 0x29c   :  { %v480_v12 = vpop.f32.mrf.mxu0 }
 0x29d   :  { %v481_v13 = vadd.f32 %v480_v12, %v396_v11  ;;  %v667_v11 = vrot.slane %v661_v10, %v77_v43  ;;  %v671_v12 = vrot.slane %v661_v10, %v81_v45 }
 0x29e   :  { %v1155_v14 = vpop.f32.mrf.mxu0 }
 0x29f   :  { %v486_v15 = vmax.f32 %v481_v13, 0.0 }
 0x2a0   :  { %v483_v16 = vpop.f32.mrf.mxu0 }
 0x2a1   :  { %v496_v18 = vpack.c.bf16 %v486_v15, %v486_v15 }
 0x2a2   :  { %v1156_v19 = vpop.f32.mrf.mxu0 }
 0x2a3   :  { %1166 = vmatmul.mubr.msk.bf16.vlgmr.msra.gmra.mxu1 %vm521_vm1, %v496_v18 }
 0x2a4   :  { %1170 = vmatpush3.bf16.msra.mxu1 %v1244_v17  ;;  %1177 = vmatprep.mubr.msk.bf16.mxu1 %vm1387_vm0, %v1386_v36 }
 0x2a5   :  { %1171 = vmatprep.subr.bf16.mxu1 %v1386_v36 }
 0x2a8   :  { %1172 = vmatpush3.bf16.msra.mxu1 %v1245_v0 }
 0x2a9   :  { %1173 = vmatprep.subr.bf16.mxu1 %v1386_v36 }
 0x2ac   :  { %1174 = vmatpush3.bf16.msra.mxu1 %v1246_v20 }
 0x2ad   :  { %1175 = vmatprep.subr.bf16.mxu1 %v1386_v36  ;;  %v495_v36 = vld [vmem:[#allocation7 + $0x30] ss:$0 sm:$0xff] }
 0x2b0   :  { %1176 = vmatpush3.bf16.msra.mxu1 %v1247_v21 }
 0x2b1   :  { %1115 = vmatprep.subr.bf16.mxu1 %v1272_v49 }
 0x363   :  { %v559_v37 = vpop.f32.mrf.mxu1 }
 0x364   :  { %v560_v38 = vadd.f32 %v559_v37, %v495_v36 }
 0x365   :  { %v1167_v39 = vpop.f32.mrf.mxu1 }
 0x366   :  { %v565_v40 = vmax.f32 %v560_v38, 0.0 }
 0x367   :  { %v562_v41 = vpop.f32.mrf.mxu1 }
 0x368   :  { %v575_v44 = vpack.c.bf16 %v565_v40, %v565_v40 }
 0x369   :  { %v1168_v46 = vpop.f32.mrf.mxu1 }
 0x36a   :  { %1178 = vmatmul.mubr.msk.bf16.vlgmr.msra.gmra.mxu1 %vm521_vm1, %v575_v44 }
 0x36b   :  { %1116 = vmatpush3.bf16.msra.mxu1 %v1273_v50 }
 0x36c   :  { %1117 = vmatprep.subr.bf16.mxu1 %v1274_v51 }
 0x36f   :  { %1118 = vmatpush3.bf16.msra.mxu1 %v1275_v52 }
 0x370   :  { %1119 = vmatprep.subr.bf16.mxu1 %v1276_v53 }
 0x373   :  { %1120 = vmatpush3.bf16.msra.mxu1 %v1277_v54 }
 0x374   :  { %1121 = vmatprep.subr.bf16.mxu1 %v1278_v55 }
 0x377   :  { %1122 = vmatpush3.bf16.msra.mxu1 %v1279_v56 }
 0x378   :  { %1123 = vmatprep.subr.bf16.mxu1 %v1280_v57 }
 0x37b   :  { %1124 = vmatpush3.bf16.msra.mxu1 %v1281_v58 }
 0x37c   :  { %1125 = vmatprep.subr.bf16.mxu1 %v1282_v59 }
 0x37f   :  { %1126 = vmatpush3.bf16.msra.mxu1 %v1283_v60 }
 0x380   :  { %1127 = vmatprep.subr.bf16.mxu1 %v1284_v6 }
 0x383   :  { %1128 = vmatpush3.bf16.msra.mxu1 %v1285_v7 }
 0x384   :  { %1129 = vmatprep.subr.bf16.mxu1 %v1286_v8 }
 0x387   :  { %1130 = vmatpush3.bf16.msra.mxu1 %v1287_v9 }
 0x42a   :  { %v637_v62 = vpop.f32.mrf.mxu1 }
 0x42b   :  { %v638_v63 = vadd.f32 %v637_v62, %v574_v61 }
 0x42c   :  { %v1179_v1 = vpop.f32.mrf.mxu1 }
 0x42d   :  { %v643_v2 = vmax.f32 %v638_v63, 0.0 }
 0x42e   :  { %v640_v3 = vpop.f32.mrf.mxu1 }
 0x42f   :  { %v662_v4 = vpack.c.bf16 %v643_v2, %v643_v2 }
 0x430   :  { %v1180_v5 = vpop.f32.mrf.mxu1 }
 0x431   :  { %787 = vmatmul.mubr.bf16.vlgmr.msra.gmra.mxu0 %v662_v4 }
 0x4f1   :  { %v788_v13 = vpop.f32.mrf.mxu0 }
 0x4f2   :  { %v789_v14 = vadd.f32 %v788_v13, %v667_v11 }
 0x4f3   :  { %v790_v15 = vpop.f32.mrf.mxu0 }
 0x4f4   :  { %v791_v16 = vadd.f32 %v790_v15, %v671_v12  ;;  %v795_v17 = vmax.f32 %v789_v14, 0.0 }
 0x4f5   :  { %v792_v18 = vpop.f32.mrf.mxu0 }
 0x4f6   :  { %v796_v19 = vmax.f32 %v791_v16, 0.0  ;;  %v830_v21 = vpack.c.bf16 %v795_v17, %v795_v17 }
 0x4f7   :  { %v793_v0 = vpop.f32.mrf.mxu0 }
 0x4f8   :  { %v831_v20 = vpack.c.bf16 %v796_v19, %v796_v19 }
 0x4fa   :  { %960 = vmatprep.mubr.bf16.mxu1 %v831_v20 }
 0x4fb   :  { %961 = vmatmul.mubr.bf16.vlgmr.msra.gmra.mxu1 %v830_v21 }
 0x5bb   :  { %v1131_v22 = vpop.f32.mrf.mxu1 }
 0x5bd   :  { %v1132_v24 = vpop.f32.mrf.mxu1 }
 0x5be   :  { %v1133_v25 = vadd.f32 %v1132_v24, %v1131_v22 }
 0x5bf   :  { %v1134_v43 = vpop.f32.mrf.mxu1 }
 0x5c0   :  { %v963_v26 = vadd.f32 %v1133_v25, %v829_v23 }
 0x5c1   :  { %v1135_v42 = vpop.f32.mrf.mxu1 }
 0x5c2   :  { %v1073_v45 = vmul.f32 -1.442695, %v963_v26 }
 0x5c4   :  { %1288 = vpow2.f32 %v1073_v45 }
 0x5d1   :  { %v1289_v27 = vpop.eup %1288 }
 0x5d2   :  { %v971_v28 = vadd.f32 1.0, %v1289_v27 }
 0x5d4   :  { %1290 = vrcp.f32 %v971_v28 }
 0x5e1   :  { %v1291_v29 = vpop.eup %1290 }
 0x5e2   :  { %974 = vst [vmem:[#allocation8] sm:$0xff] %v1291_v29 }
 0x5e3   :  { %1363 = shalt.err (!%p1360_p5)
}
 0x5e4   :  { %984 = dma.vmem_to_hbm [thread:$0]  %s982_s2, 128, %s1462_s3, [#allocation4]  }
 0x5e5   :  { %1376 = dma.done.wait [#allocation4], 128  }
 0x5e6   :  { %1377 = vsyncadd [#allocation4], 4294967168 }
 0x5e7   :  { %988 = vsyncpa [#allocation3], 1 }
 0x5e8   :  { %989 = vsyncpa [#allocation6], 1 }
 0x5e9   :  { %990 = vsyncpa [#allocation4], 1 }

</bundles_post_ra>
